<compile_context>
chip_gen: v7x
topology: tpu7x:2x2x1
jax: 0.10.0
libtpu: 0.0.40
codegen_flags: <defaults>
</compile_context>

<pallas_src>
import functools

import jax
import jax.numpy as jnp
from jax.experimental import pallas as pl
from jax.experimental.pallas import tpu as pltpu


def _vmem_capacity_bytes():
    """Per-TensorCore VMEM capacity; conservative fallback = v7x (64 MiB)."""
    try:
        return int(pltpu.get_tpu_info().vmem_capacity_bytes)
    except Exception:
        return 64 << 20


def _choose_block_rows(rows, d, itemsize, vmem_cap):
    """Pick the row-tile size tm for a (rows, d) RMSNorm.

    Budget ~1/4 of VMEM for the working set: double-buffered input + output tiles
    plus a couple of f32 temporaries, so it scales with the generation
    (128 MiB on v5e/v6e, 64 MiB on v7x).
    """
    # Sublane alignment: 8 for 4-byte dtypes, 16 for bf16, 32 for int8/fp8.
    align = max(8, 32 // itemsize)
    if rows <= align:
        # Single full-extent block in the row dim (always a legal block shape).
        return int(rows)

    per_row_bytes = d * (4 * itemsize + 2 * 4)       # 2x in + 2x out + ~2 f32 temps
    tm = (vmem_cap // 4) // max(per_row_bytes, 1)
    tm = min(tm, 1024)                               # >~1-8 MiB/step buys no more BW
    tm = min(tm, align * pl.cdiv(rows, align))       # never exceed the row count
    # Keep at least 2 grid steps so v7x can shard the axis across both TensorCores
    # (no-op on v5e/v6e which have a single TC).
    tm = min(tm, align * pl.cdiv(pl.cdiv(rows, 2), align))
    tm = max(align, (tm // align) * align)
    return int(tm)


def _rmsnorm_kernel(x_ref, scale_ref, o_ref, *, d, eps):
    # x_ref:     (tm, d) tile of rows
    # scale_ref: (1, d)  broadcast scale
    x = x_ref[...]
    scale = scale_ref[...].astype(jnp.float32)

    xf = x.astype(jnp.float32)                       # f32 accumulate for the reduce
    sumsq = jnp.sum(xf * xf, axis=-1, keepdims=True)  # (tm, 1), XLU reduction
    rms = jnp.sqrt(sumsq) * (float(d) ** -0.5)
    denom = rms + eps                                 # eps on rms, matching the spec

    # Per-row reciprocal on the EUP (only tm values) instead of a per-element divide;
    # one Newton-Raphson step restores full f32 accuracy at (tm,1) cost.
    inv = pl.reciprocal(denom, approx=True)
    inv = inv * (2.0 - denom * inv)

    o_ref[...] = ((xf * inv) * scale).astype(o_ref.dtype)


def rmsnorm(x, scale, *, eps=1e-8, block_rows=None):
    """RMSNorm over the last dim of x. x: (..., d), scale: (d,)."""
    d = x.shape[-1]
    assert scale.shape == (d,)

    orig_shape = x.shape
    x2d = x.reshape(-1, d)                            # (rows, d)
    rows = x2d.shape[0]

    itemsize = jnp.dtype(x.dtype).itemsize
    vmem_cap = _vmem_capacity_bytes()
    tm = block_rows if block_rows is not None else _choose_block_rows(
        rows, d, itemsize, vmem_cap)

    scale2d = scale.reshape(1, d)
    kernel = functools.partial(_rmsnorm_kernel, d=d, eps=eps)

    out = pl.pallas_call(
        kernel,
        out_shape=jax.ShapeDtypeStruct((rows, d), x.dtype),
        grid_spec=pltpu.PrefetchScalarGridSpec(
            num_scalar_prefetch=0,
            grid=(pl.cdiv(rows, tm),),                # tail block masked by Pallas
            in_specs=[
                pl.BlockSpec((tm, d), lambda i: (i, 0)),
                pl.BlockSpec((1, d), lambda i: (0, 0)),
            ],
            out_specs=pl.BlockSpec((tm, d), lambda i: (i, 0)),
        ),
        compiler_params=pltpu.CompilerParams(
            dimension_semantics=("parallel",),
            # Raise the scoped VMEM limit so the enlarged, double-buffered tiles
            # fit (defaults: 16 MiB v5e / 32 MiB v6e,v7x). Working set is budgeted
            # at ~1/4 of capacity, so half-capacity leaves 2x headroom.
            vmem_limit_bytes=int(min(vmem_cap // 2, 128 << 20)),
        ),
        # If a trace still shows exposed DMA, add pipeline_mode=pl.Buffered(3) on
        # in_specs[0] (cheap to try; revert if VMEM-bound).
    )(x2d, scale2d)

    return out.reshape(orig_shape)


def rmsnorm_ref(x, scale, eps=1e-8):
    d = x.shape[-1]
    norm_x = jnp.linalg.norm(x.astype(jnp.float32), axis=-1, keepdims=True)
    rms_x = norm_x * (float(d) ** -0.5)
    x_normed = x.astype(jnp.float32) / (rms_x + eps)
    return (scale.astype(jnp.float32) * x_normed).astype(x.dtype)


if __name__ == "__main__":
    key = jax.random.PRNGKey(0)
    batch, seq, hidden = 2, 8, 32

    x = jax.random.normal(key, (batch, seq, hidden), dtype=jnp.float32)
    # Deterministic parameter init matching nn.Parameter(torch.ones(d)).
    scale = jnp.ones((hidden,), dtype=jnp.float32)

    out = rmsnorm(x, scale, eps=1e-8)
    out = jax.block_until_ready(out)

    ref = rmsnorm_ref(x, scale, eps=1e-8)
    assert out.shape == x.shape
    assert jnp.allclose(out, ref, atol=1e-5, rtol=1e-5), "mismatch vs reference"

    # Ragged-row case (rows not a multiple of the tile): exercises the masked tail
    # block that replaced the host-side jnp.pad, plus a non-trivial scale.
    k1, k2 = jax.random.split(jax.random.PRNGKey(1))
    x2 = jax.random.normal(k1, (3, 5, hidden), dtype=jnp.float32)
    scale2 = 1.0 + 0.1 * jax.random.normal(k2, (hidden,), dtype=jnp.float32)
    out2 = jax.block_until_ready(rmsnorm(x2, scale2, eps=1e-8))
    ref2 = rmsnorm_ref(x2, scale2, eps=1e-8)
    assert jnp.allclose(out2, ref2, atol=1e-5, rtol=1e-5), "mismatch (ragged case)"

    print("KERNEL_OK")
</pallas_src>

<mosaic_0001>
module attributes {stable_mosaic.version = 11 : i64} {
  func.func @_rmsnorm_kernel(%arg0: i32, %arg1: memref<8x32xf32, #tpu.memory_space<vmem>>, %arg2: memref<1x32xf32, #tpu.memory_space<vmem>>, %arg3: memref<8x32xf32, #tpu.memory_space<vmem>>) attributes {dimension_semantics = [#tpu.dimension_semantics<parallel>], iteration_bounds = array<i64: 2>, scalar_prefetch = 0 : i64, scratch_operands = 0 : i64, tpu.core_type = #tpu.core_type<tc>, window_params = [{transform_indices = @transform_0, window_bounds = array<i64: 8, 32>}, {pipeline_mode = #tpu.pipeline_mode<synchronous>, transform_indices = @transform_1, window_bounds = array<i64: 1, 32>}, {transform_indices = @transform_2, window_bounds = array<i64: 8, 32>}]} {
    %c0 = arith.constant 0 : index
    %c0_0 = arith.constant 0 : index
    %0 = vector.load %arg1[%c0, %c0_0] : memref<8x32xf32, #tpu.memory_space<vmem>>, vector<8x32xf32>
    %c0_1 = arith.constant 0 : index
    %c0_2 = arith.constant 0 : index
    %1 = vector.load %arg2[%c0_1, %c0_2] : memref<1x32xf32, #tpu.memory_space<vmem>>, vector<1x32xf32>
    %2 = arith.mulf %0, %0 : vector<8x32xf32>
    %cst = arith.constant dense<0.000000e+00> : vector<8xf32>
    %3 = vector.multi_reduction <add>, %2, %cst [1] : vector<8x32xf32> to vector<8xf32>
    %4 = vector.shape_cast %3 : vector<8xf32> to vector<8x1xf32>
    %5 = math.sqrt %4 : vector<8x1xf32>
    %cst_3 = arith.constant 0.176776692 : f32
    %6 = vector.broadcast %cst_3 : f32 to vector<8x1xf32>
    %7 = arith.mulf %5, %6 : vector<8x1xf32>
    %cst_4 = arith.constant 9.99999993E-9 : f32
    %8 = vector.broadcast %cst_4 : f32 to vector<8x1xf32>
    %9 = arith.addf %7, %8 : vector<8x1xf32>
    %10 = tpu.reciprocal %9 {approx = true} : vector<8x1xf32> -> vector<8x1xf32>
    %11 = arith.mulf %9, %10 : vector<8x1xf32>
    %cst_5 = arith.constant 2.000000e+00 : f32
    %12 = vector.broadcast %cst_5 : f32 to vector<8x1xf32>
    %13 = arith.subf %12, %11 : vector<8x1xf32>
    %14 = arith.mulf %10, %13 : vector<8x1xf32>
    %15 = vector.broadcast %14 : vector<8x1xf32> to vector<8x32xf32>
    %16 = arith.mulf %0, %15 : vector<8x32xf32>
    %17 = vector.broadcast %1 : vector<1x32xf32> to vector<8x32xf32>
    %18 = arith.mulf %16, %17 : vector<8x32xf32>
    %c0_6 = arith.constant 0 : index
    %c0_7 = arith.constant 0 : index
    %19 = vector.load %arg3[%c0_6, %c0_7] : memref<8x32xf32, #tpu.memory_space<vmem>>, vector<8x32xf32>
    tpu.vector_store %arg3[%c0_6, %c0_7], %18 {strides = array<i32>} : memref<8x32xf32, #tpu.memory_space<vmem>>, vector<8x32xf32>,
    return
  }
  func.func @transform_0(%arg0: i32) -> (i32, i32) {
    %c0_i32 = arith.constant 0 : i32
    %c0_i32_0 = arith.constant 0 : i32
    return %arg0, %c0_i32 : i32, i32
  }
  func.func @transform_1(%arg0: i32) -> (i32, i32) {
    %c0_i32 = arith.constant 0 : i32
    %c0_i32_0 = arith.constant 0 : i32
    %c0_i32_1 = arith.constant 0 : i32
    return %c0_i32, %c0_i32_0 : i32, i32
  }
  func.func @transform_2(%arg0: i32) -> (i32, i32) {
    %c0_i32 = arith.constant 0 : i32
    %c0_i32_0 = arith.constant 0 : i32
    return %arg0, %c0_i32 : i32, i32
  }
}

</mosaic_0001>

<bundles_post_ra>
// kernel: tpu_custom_call.1
= control target key start
LH: loop header
LB: loop body
LE: loop exit
PB: predicated region body
PF: predicated region fallthrough
CT: control target
= control target key end

     0   :  { %7 = vsyncpa [#allocation3], 0  ;;  %s616_s0 = inlined_call_operand.hbm [shape: f32[16,32], index: 0, kind: input, shape index: {}]   ;;  %s617_s1 = inlined_call_operand.vmem [shape: f32[1,32], index: 1, kind: input, shape index: {}]   ;;  %s618_s2 = inlined_call_operand.hbm [shape: f32[16,32], index: 2, kind: output, shape index: {}]  }
   0x1   :  { %9 = vsyncpa [#allocation3 + $0x1], 0 }
   0x2   :  { %10 = vsyncpa [#allocation4], 0 }
   0x3   :  { %12 = vsyncpa [#allocation4 + $0x1], 0  ;;  %s450_s9 = smov 0   ;;  %s452_s10 = smov 0  }
   0x4   :  { %s454_s11 = smov 0   ;;  %s456_s12 = smov 0  }
   0x5 LB: > { %s471_s13 = sadd.s32 4294967295, %s431_s12   ;;  %s272_s14 = sadd.s32 4294967294, %s431_s12   ;;  %s431_s12 = sphi %s456_s12, %s633_s12   ;;  %s427_s11 = sphi %s454_s11, %s632_s11   ;;  %s423_s10 = sphi %s452_s10, %s631_s10   ;;  %s419_s9 = sphi %s450_s9, %s630_s9  }
   0x6   : > { %s475_s15 = sadd.s32 1, %s431_s12   ;;  %s25_s16 = sadd.s32 1, %s427_s11 }
   0x7   : > { %s22_s17 = ssub.s32 %s431_s12, %s475_s15  ;;  %p32_p0 = scmp.ne.s32.totalorder %s427_s11, %s423_s10 }
   0x8   : > { %p23_p1 = scmp.eq.s32.totalorder %s22_s17, 0  ;;  %p33_p2 = scmp.eq.s32.totalorder %s431_s12, 0 }
   0x9   : > { %p38_p3 = scmp.ne.s32.totalorder %s423_s10, %s419_s9  ;;  %p39_p4 = scmp.eq.s32.totalorder %s471_s13, 0 }
   0xa   : > { %s487_s18 = scalar_select %p23_p1, %s427_s11, %s25_s16  }
   0xb   : > { %p489_p5 = por %p33_p2, %p32_p0  ;;  %p493_p6 = por %p39_p4, %p38_p3 }
   0xc   : > { %p83_p7 = scmp.eq.s32.totalorder %s471_s13, 1  ;;  %p89_p8 = scmp.eq.s32.totalorder %s272_s14, 1 }
   0xd   : > { %p297_p10 = scmp.lt.s32.totalorder %s431_s12, 2  ;;  %s112_s23 = sand.u32 1, %s427_s11  }
   0xe   : > { %p500_p11 = por %p83_p7, %p32_p0  ;;  %p504_p12 = por %p89_p8, %p38_p3 }
   0xf   : > { %s276_s24 = sshll.u32 %s431_s12, 7  ;;  %s275_s25 = sshll.u32 %s112_s23, 3 }
  0x10   : > { %s622_s21 = scalar_select %p500_p11, 1, 0 }
  0x11   : > { %s623_s22 = scalar_select %p504_p12, 1, 0 }
  0x12   : > { %s513_s28 = scalar_lea.hbm %s616_s0, %s276_s24  ;;  %s116_s29 = scalar_lea.vmem [#allocation2], %s275_s25 }
  0x13   : > { %s123_s30 = sshll.u32 %s116_s29, 4  ;;  %p517_p13 = pnand %p297_p10, %p489_p5  ;;  %s521_s30 = int_to_ptr.vmem [resolvable:$true] %s123_s30 }
  0x14   : > { %s113_s4 = scalar_lea.sflag [#allocation3], %s112_s23  ;;  %s335_s5 = scalar_lea.hbm %s513_s28, 128 }
  0x15   : > { %p336_p2 = scmp.ne.s32.totalorder %s513_s28, %s335_s5  ;;  %p337_p3 = pneg %p517_p13 }
  0x16   : > { %s340_s8 = scalar_lea.hbm %s616_s0, 256  ;;  %p341_p5 = scmp.lt.u32.totalorder %s513_s28, %s616_s0 }
  0x17   : > { %p338_p4 = pnand %p337_p3, %p336_p2  ;;  %p342_p8 = scmp.lt.u32.totalorder %s340_s8, %s335_s5 }
  0x18   : > { %p344_p9 = scmp.lt.u32.totalorder %s335_s5, %s513_s28 }
  0x19   : > { %p339_p7 = pneg %p338_p4  ;;  %p343_p10 = por %p342_p8, %p341_p5 }
  0x1b   : > { %p345_p0 = por %p344_p9, %p343_p10 }
  0x1d   : > { %p346_p1 = pnand %p345_p0, %p339_p7 }
  0x1f   : > { %349 = shalt.err (!%p346_p1)
}
  0x20   : > { %s350_s17 = scalar_lea.vmem %s521_s30, 128  ;;  %s433_s19 = smov [#allocation2]  }
  0x21   : > { %p351_p2 = scmp.ne.s32.totalorder %s521_s30, %s350_s17  ;;  %s355_s23 = sshll.u32 %s433_s19, 4  ;;  %s356_s23 = int_to_ptr.vmem [resolvable:$false] %s355_s23 }
  0x22   : > { %s357_s24 = scalar_lea.vmem %s356_s23, 256  ;;  %p358_p11 = scmp.lt.s32.totalorder %s521_s30, %s356_s23 }
  0x23   : > { %p353_p4 = pnand %p351_p2, %p337_p3  ;;  %p359_p5 = scmp.lt.s32.totalorder %s357_s24, %s350_s17 }
  0x25   : > { %p354_p12 = pneg %p353_p4  ;;  %p360_p8 = por %p359_p5, %p358_p11 }
  0x27   : > { %p361_p9 = pnand %p360_p8, %p354_p12 }
  0x29   : > { %364 = shalt.err (!%p361_p9)
}
  0x2a   : > { %292 = dma.hbm_to_vmem [thread:$0]  (!%p517_p13), %s513_s28, 128, %s521_s30, %s113_s4  }
  0x2b   : > { %p625_p0 = scmp.lt.s32.totalorder %s431_s12, 3  ;;  %p626_p1 = scmp.ge.s32.totalorder %s431_s12, 1 }
  0x2d   : > { %p129_p3 = pnand %p626_p1, %p625_p0 }
  0x2e   : > { %s555_s25 = sand.u32 (!%p129_p3), 1, %s423_s10  }
  0x2f   : > { %132 = sbr.rel (%p129_p3) target bundleno = 255 (0xff), region = 28  ;;  %s278_s26 = sshll.u32 (!%p129_p3), %s555_s25, 3 }
  0x30   : > { %s135_s27 = scalar_lea.sflag (!%p129_p3), [#allocation3], %s555_s25  ;;  %s138_s29 = scalar_lea.vmem (!%p129_p3), [#allocation2], %s278_s26 }
  0x36   : > { %410 = dma.done.wait (%p493_p6), %s135_s27, 128  }
  0x37   : > { %412 = vsyncadd (%p493_p6), %s135_s27, 4294967168  ;;  %v159_v0 = vld [vmem:[%s138_s29] sm:$0xff]  ;;  %vm162_vm0 = vcmask 261120   ;;  %s282_s30 = sshll.u32 %s471_s13, 7  ;;  %s158_s3 = scalar_lea.vmem [#allocation5], %s278_s26 }
  0x38   : > { %v161_v1 = vmul.f32 %v159_v0, %v159_v0  ;;  %v280_v15 = vld [vmem:[%s617_s1] ss:$0 sm:$0xff]  ;;  %s202_s4 = sshll.u32 %s158_s3, 4  ;;  %s571_s7 = scalar_lea.hbm %s618_s2, %s282_s30  ;;  %s573_s4 = int_to_ptr.vmem [resolvable:$true] %s202_s4 }
  0x39   : > { %s189_s8 = scalar_lea.sflag [#allocation4], %s555_s25  ;;  %s365_s14 = scalar_lea.vmem %s573_s4, 128 }
  0x3a   : > { %v163_v2 = vsel %vm162_vm0, %v161_v1, 0.0  ;;  %p366_p6 = scmp.ne.s32.totalorder %s573_s4, %s365_s14  ;;  %p627_p11 = scmp.ne.s32.totalorder %s622_s21, 0 }
  0x3b   : > { %164 = vadd.xlane.f32.xlu0 %v163_v2  ;;  %s434_s13 = smov [#allocation5]  }
  0x3c   : > { %p367_p12 = pnand %p366_p6, %p627_p11  ;;  %s369_s16 = sshll.u32 %s434_s13, 4  ;;  %s370_s16 = int_to_ptr.vmem [resolvable:$false] %s369_s16 }
  0x3d   : > { %s371_s17 = scalar_lea.vmem %s370_s16, 256  ;;  %p372_p7 = scmp.lt.s32.totalorder %s573_s4, %s370_s16 }
  0x3e   : > { %p368_p13 = pneg %p367_p12  ;;  %p373_p10 = scmp.lt.s32.totalorder %s371_s17, %s365_s14 }
  0x40   : > { %p374_p2 = por %p373_p10, %p372_p7 }
  0x42   : > { %p375_p4 = pnand %p374_p2, %p368_p13 }
  0xc8   : > { %v165_v3 = vpop.xlane.xlu0 %164 }
  0xc9   : > { %331 = vrsqrt.f32 %v165_v3  ;;  %vm168_vm1 = vcmp.eq.f32.partialorder %v165_v3, inf  ;;  %v171_v6 = vand.u32 2147483648, %v165_v3  ;;  %vm170_vm2 = vcmp.eq.f32.partialorder %v165_v3, 0.0 }
  0xd3   : > { %v332_v4 = vpop.eup %331 }
  0xd4   : > { %v167_v5 = vmul.f32 %v332_v4, %v165_v3 }
  0xd6   : > { %v169_v7 = vsel %vm168_vm1, %v165_v3, %v167_v5 }
  0xd7   : > { %v172_v8 = vsel %vm170_vm2, %v171_v6, %v169_v7 }
  0xd8   : > { %v173_v9 = vmul.f32 0.17677669, %v172_v8 }
  0xda   : > { %v174_v10 = vadd.f32 1e-08, %v173_v9 }
  0xdc   : > { %333 = vrcp.f32 %v174_v10 }
  0xe6   : > { %v334_v11 = vpop.eup %333 }
  0xe7   : > { %v176_v12 = vmul.f32 %v334_v11, %v174_v10 }
  0xe9   : > { %v177_v13 = vsub.f32 2.0, %v176_v12 }
  0xeb   : > { %v178_v14 = vmul.f32 %v334_v11, %v177_v13 }
  0xed   : > { %v179_v16 = vmul.f32 %v178_v14, %v159_v0 }
  0xef   : > { %v186_v17 = vmul.f32 %v280_v15, %v179_v16 }
  0xf1   : > { %187 = vst.msk [vmem:[%s158_s3] sm:$0xff] %vm162_vm0, %v186_v17 }
  0xf2   : > { %378 = shalt.err (!%p375_p4)
}
  0xf3   : > { %s379_s19 = scalar_lea.hbm %s571_s7, 128  ;;  %s383_s25 = scalar_lea.hbm %s618_s2, 256 }
  0xf4   : > { %p380_p5 = scmp.ne.s32.totalorder %s571_s7, %s379_s19  ;;  %p384_p0 = scmp.lt.u32.totalorder %s571_s7, %s618_s2 }
  0xf5   : > { %p385_p1 = scmp.lt.u32.totalorder %s383_s25, %s379_s19  ;;  %p387_p6 = scmp.lt.u32.totalorder %s379_s19, %s571_s7 }
  0xf6   : > { %p381_p8 = pnand %p380_p5, %p627_p11 }
  0xf7   : > { %p386_p3 = por %p385_p1, %p384_p0 }
  0xf8   : > { %p382_p9 = pneg %p381_p8 }
  0xf9   : > { %p388_p12 = por %p387_p6, %p386_p3 }
  0xfb   : > { %p389_p13 = pnand %p388_p12, %p382_p9 }
  0xfd   : > { %392 = shalt.err (!%p389_p13)
}
  0xfe   : > { %287 = dma.vmem_to_hbm [thread:$0]  (%p627_p11), %s573_s4, 128, %s571_s7, %s189_s8  }
  0xff PF: > { %s214_s29 = sand.u32 1, %s419_s9   ;;  %p628_p7 = scmp.ne.s32.totalorder %s623_s22, 0 }
 0x100   : > { %p629_p10 = scmp.ge.s32.totalorder %s431_s12, 2  ;;  %s215_s20 = scalar_lea.sflag [#allocation4], %s214_s29 }
 0x102   : > { %p294_p2 = pnand %p629_p10, %p628_p7 }
 0x104   : > { %414 = dma.done.wait (!%p294_p2), %s215_s20, 128  }
 0x105   : > { %416 = vsyncadd (!%p294_p2), %s215_s20, 4294967168  ;;  %p15_p4 = scmp.ge.s32.totalorder %s475_s15, 4   ;;  %s630_s9 = smov %s423_s10 }
 0x106   : > { %s631_s10 = smov %s427_s11  ;;  %s632_s11 = smov %s487_s18 }
 0x107   : > { %s633_s12 = smov %s475_s15  ;;  %17 = sbr.rel (!%p15_p4) target bundleno = 5 (0x5), region = 73 }
 0x10e   :  { %220 = vsyncpa [#allocation3], 1 }
 0x10f   :  { %222 = vsyncpa [#allocation3 + $0x1], 1 }
 0x110   :  { %223 = vsyncpa [#allocation4], 1 }
 0x111   :  { %225 = vsyncpa [#allocation4 + $0x1], 1 }

</bundles_post_ra>
